<compile_context>
chip_gen: v5e
topology: v5e:2x2
jax: 0.10.0
libtpu: 0.0.40
codegen_flags: <defaults>
</compile_context>

<pallas_src>
import functools

import jax
import jax.numpy as jnp
from jax.experimental import pallas as pl
from jax.experimental.pallas import tpu as pltpu

_LANES = 128
# ~4 MiB per input tile (8192 rows x 128 lanes x 4 B for fp32; row count is
# scaled by itemsize so bf16/int8 tiles stay ~4 MiB and remain multiples of
# the 16/32-row sublane packing).
_TARGET_TILE_BYTES = 4 * 1024 * 1024
# Below this total size, skip the kernel: launch overhead dominates and a
# plain XLA multiply/divide lets the scale fuse into producers/consumers.
_FAST_PATH_BYTES = 1 * 1024 * 1024


def _scaler_kernel(x_ref, o_ref, *, rate):
    # x_ref/o_ref: (block_rows, 128) VMEM tiles. `rate` is a compile-time
    # Python float.  True division keeps bit-exact parity with `input / rate`;
    # the EUP reciprocal/refine it lowers to is free in a memory-bound kernel.
    o_ref[...] = x_ref[...] / rate


def _round_up(a, m):
    return ((a + m - 1) // m) * m


def _scale_slab(x2d, rate, block_rows, donate_input=False):
    rows, lanes = x2d.shape
    nbytes = int(x2d.size) * x2d.dtype.itemsize
    return pl.pallas_call(
        functools.partial(_scaler_kernel, rate=rate),
        out_shape=jax.ShapeDtypeStruct((rows, lanes), x2d.dtype),
        grid=(pl.cdiv(rows, block_rows),),
        in_specs=[pl.BlockSpec((block_rows, lanes), lambda i: (i, 0))],
        out_specs=pl.BlockSpec((block_rows, lanes), lambda i: (i, 0)),
        compiler_params=pltpu.CompilerParams(
            dimension_semantics=("parallel",),
            vmem_limit_bytes=32 * 1024 * 1024,
        ),
        cost_estimate=pl.CostEstimate(
            flops=int(x2d.size),
            transcendentals=0,
            bytes_accessed=2 * nbytes,
        ),
        # Opt-in donation: halves HBM footprint for large activations when the
        # caller's buffer is dead after this op.
        input_output_aliases=({0: 0} if donate_input else {}),
    )(x2d)


def scaler_forward(x, rate, training=True, donate_input=False):
    """Pallas equivalent of Scaler.forward.

    x:        float array (any shape, e.g. NCHW)
    rate:     python float (divisor)
    training: mirrors nn.Module.training
    """
    if not training:
        # Eval mode is a pure identity — no kernel needed.
        return x

    rate = float(rate)
    total = int(x.size)
    if total == 0:
        return x

    itemsize = x.dtype.itemsize
    # Fast path: tiny tensors (launch overhead dominates, XLA can fuse the
    # scale away) and element counts not divisible by 128 (avoids the
    # pad/slice/concatenate round trips that multiply HBM traffic).
    if total * itemsize < _FAST_PATH_BYTES or total % _LANES != 0:
        return x / rate

    rows = total // _LANES
    x2d = jnp.reshape(x, (rows, _LANES))  # contiguous reshape: free

    # ~4 MiB tiles, itemsize-scaled so packed dtypes keep the same footprint.
    block_rows_target = max(8, _TARGET_TILE_BYTES // (_LANES * itemsize))
    # Guarantee >= 2 grid steps on medium tensors so both v7x TensorCores get
    # work; for large tensors this leaves the ~4 MiB target tile untouched.
    block_rows = min(block_rows_target, _round_up(pl.cdiv(rows, 2), 8))

    out2d = _scale_slab(x2d, rate, block_rows, donate_input=donate_input)
    return jnp.reshape(out2d, x.shape)


if __name__ == "__main__":
    key = jax.random.PRNGKey(0)
    rate = 0.5  # Scaler(rate=0.5)

    # 1) Small NCHW input consistent with the module -> small-size fast path.
    x = jax.random.normal(key, (2, 4, 16, 16), dtype=jnp.float32)
    y = jax.block_until_ready(scaler_forward(x, rate, training=True))
    assert y.shape == x.shape and y.dtype == x.dtype
    assert jnp.allclose(y, x / rate, atol=0.0, rtol=0.0)

    # Eval-mode forward (identity).
    y_eval = jax.block_until_ready(scaler_forward(x, rate, training=False))
    assert jnp.array_equal(y_eval, x)

    # 2) Larger tensor -> Pallas kernel path (2 MiB => 4096 rows, 2 parallel
    #    grid steps so both TensorCores stream on v7x).
    k1, k2 = jax.random.split(key)
    x_big = jax.random.normal(k1, (8, 16, 64, 64), dtype=jnp.float32)
    y_big = jax.block_until_ready(scaler_forward(x_big, rate, training=True))
    assert y_big.shape == x_big.shape and y_big.dtype == x_big.dtype
    assert jnp.allclose(y_big, x_big / rate, atol=0.0, rtol=0.0)

    # 3) Explicit partial-trailing-block check on real hardware:
    #    rows % block_rows != 0 exercises Pallas's masked final block.
    x2d = jax.random.normal(k2, (2400, 128), dtype=jnp.float32)
    y2d = jax.block_until_ready(_scale_slab(x2d, rate, block_rows=1024))
    assert jnp.allclose(y2d, x2d / rate, atol=0.0, rtol=0.0)

    # 4) Unaligned element count (<128 remainder) -> plain-XLA path
    #    (no slice/concat extra HBM passes).
    x_odd = jax.random.normal(k2, (2, 3, 5, 7), dtype=jnp.float32)  # 210 elems
    y_odd = jax.block_until_ready(scaler_forward(x_odd, rate, training=True))
    assert jnp.allclose(y_odd, x_odd / rate, atol=0.0, rtol=0.0)

    print("KERNEL_OK")
</pallas_src>

<mosaic_0001>
module attributes {stable_mosaic.version = 11 : i64} {
  func.func @_scaler_kernel(%arg0: i32, %arg1: memref<2048x128xf32, #tpu.memory_space<vmem>>, %arg2: memref<2048x128xf32, #tpu.memory_space<vmem>>) attributes {dimension_semantics = [#tpu.dimension_semantics<parallel>], iteration_bounds = array<i64: 2>, scalar_prefetch = 0 : i64, scratch_operands = 0 : i64, tpu.core_type = #tpu.core_type<tc>, window_params = [{transform_indices = @transform_0, window_bounds = array<i64: 2048, 128>}, {transform_indices = @transform_1, window_bounds = array<i64: 2048, 128>}]} {
    %c0 = arith.constant 0 : index
    %c0_0 = arith.constant 0 : index
    %0 = vector.load %arg1[%c0, %c0_0] : memref<2048x128xf32, #tpu.memory_space<vmem>>, vector<2048x128xf32>
    %cst = arith.constant 5.000000e-01 : f32
    %1 = vector.broadcast %cst : f32 to vector<2048x128xf32>
    %2 = arith.divf %0, %1 : vector<2048x128xf32>
    %c0_1 = arith.constant 0 : index
    %c0_2 = arith.constant 0 : index
    %3 = vector.load %arg2[%c0_1, %c0_2] : memref<2048x128xf32, #tpu.memory_space<vmem>>, vector<2048x128xf32>
    tpu.vector_store %arg2[%c0_1, %c0_2], %2 {strides = array<i32>} : memref<2048x128xf32, #tpu.memory_space<vmem>>, vector<2048x128xf32>,
    return
  }
  func.func @transform_0(%arg0: i32) -> (i32, i32) {
    %c0_i32 = arith.constant 0 : i32
    %c0_i32_0 = arith.constant 0 : i32
    return %arg0, %c0_i32 : i32, i32
  }
  func.func @transform_1(%arg0: i32) -> (i32, i32) {
    %c0_i32 = arith.constant 0 : i32
    %c0_i32_0 = arith.constant 0 : i32
    return %arg0, %c0_i32 : i32, i32
  }
}

</mosaic_0001>

<bundles_post_ra>
// kernel: tpu_custom_call.1
= control target key start
LH: loop header
LB: loop body
LE: loop exit
PB: predicated region body
PF: predicated region fallthrough
CT: control target
= control target key end

     0   :  { %6 = vsyncpa [#allocation3], 0  ;;  %s2087_s0 = inlined_call_operand.hbm [shape: f32[4096,128], index: 0, kind: input, shape index: {}]   ;;  %s2088_s1 = inlined_call_operand.hbm [shape: f32[4096,128], index: 1, kind: output, shape index: {}]  }
   0x1   :  { %8 = vsyncpa [#allocation3 + $0x1], 0 }
   0x2   :  { %9 = vsyncpa [#allocation4], 0 }
   0x3   :  { %11 = vsyncpa [#allocation4 + $0x1], 0  ;;  %s1185_s6 = smov 0   ;;  %s1187_s7 = smov 0  }
   0x4   :  { %s1189_s8 = smov 0   ;;  %s1191_s9 = smov 0  }
   0x5 LB: > { %s1206_s10 = sadd.s32 4294967295, %s1168_s9   ;;  %s1003_s11 = sadd.s32 4294967294, %s1168_s9   ;;  %s1168_s9 = sphi %s1191_s9, %s2098_s9   ;;  %s1164_s8 = sphi %s1189_s8, %s2097_s8   ;;  %s1160_s7 = sphi %s1187_s7, %s2096_s7   ;;  %s1156_s6 = sphi %s1185_s6, %s2095_s6  }
   0x6   : > { %s1210_s12 = sadd.s32 1, %s1168_s9   ;;  %s24_s13 = sadd.s32 1, %s1164_s8 }
   0x7   : > { %s21_s14 = ssub.s32 %s1168_s9, %s1210_s12  ;;  %p31_p0 = scmp.ne.s32.totalorder %s1164_s8, %s1160_s7 }
   0x8   : > { %p22_p1 = scmp.eq.s32.totalorder %s21_s14, 0  ;;  %p32_p2 = scmp.eq.s32.totalorder %s1168_s9, 0 }
   0x9   : > { %p37_p3 = scmp.ne.s32.totalorder %s1160_s7, %s1156_s6  ;;  %p38_p4 = scmp.eq.s32.totalorder %s1206_s10, 0 }
   0xa   : > { %s1222_s15 = scalar_select %p22_p1, %s1164_s8, %s24_s13  }
   0xb   : > { %p1224_p5 = por %p32_p2, %p31_p0  ;;  %p1228_p6 = por %p38_p4, %p37_p3 }
   0xc   : > { %p61_p7 = scmp.eq.s32.totalorder %s1206_s10, 1  ;;  %p67_p8 = scmp.eq.s32.totalorder %s1003_s11, 1 }
   0xd   : > { %p1031_p10 = scmp.lt.s32.totalorder %s1168_s9, 2  ;;  %s87_s20 = sand.u32 1, %s1164_s8  }
   0xe   : > { %p1235_p11 = por %p61_p7, %p31_p0  ;;  %p1239_p12 = por %p67_p8, %p37_p3 }
   0xf   : > { %s1017_s21 = sshll.u32 %s1168_s9, 11  ;;  %s1006_s22 = sshll.u32 %s87_s20, 11 }
  0x10   : > { %s96_s25 = scalar_lea.hbm %s2087_s0, %s1017_s21  ;;  %s91_s27 = scalar_lea.vmem [#allocation2], %s1006_s22 }
  0x11   : > { %s97_s26 = sshll.u32 %s96_s25, 4  ;;  %s99_s28 = sshll.u32 %s91_s27, 4  ;;  %s98_s26 = int_to_ptr.hbm [resolvable:$true] %s97_s26  ;;  %s100_s28 = int_to_ptr.vmem [resolvable:$true] %s99_s28 }
  0x12   : > { %p1250_p13 = pnand %p1031_p10, %p1224_p5  ;;  %p1009_p0 = scmp.ge.s32.totalorder %s1168_s9, 1 }
  0x13   : > { %p107_p1 = scmp.lt.s32.totalorder %s1168_s9, 3  ;;  %s88_s30 = scalar_lea.sflag [#allocation3], %s87_s20 }
  0x14   : > { %s1072_s2 = sshra.s32 %s98_s26, 4  ;;  %p1076_p3 = pneg %p1250_p13  ;;  %s1073_s2 = int_to_ptr.hbm [resolvable:$true] %s1072_s2 }
  0x15   : > { %s1074_s3 = scalar_lea.hbm %s1073_s2, 2048  ;;  %s1079_s11 = scalar_lea.hbm %s2087_s0, 4096 }
  0x16   : > { %p1075_p2 = scmp.ne.s32.totalorder %s1073_s2, %s1074_s3  ;;  %p1080_p5 = scmp.lt.s32.totalorder %s1073_s2, %s2087_s0 }
  0x17   : > { %p1081_p8 = scmp.lt.s32.totalorder %s1079_s11, %s1074_s3 }
  0x18   : > { %p1077_p4 = pnand %p1076_p3, %p1075_p2 }
  0x19   : > { %p1082_p10 = por %p1081_p8, %p1080_p5 }
  0x1a   : > { %p1078_p7 = pneg %p1077_p4 }
  0x1c   : > { %p1083_p9 = pnand %p1082_p10, %p1078_p7 }
  0x1e   : > { %1086 = shalt.err (!%p1083_p9)
}
  0x1f   : > { %s1170_s16 = smov 128   ;;  %s1171_s20 = smov 8  }
  0x20   : > { %1026 = dma.hbm_to_vmem [thread:$0]  (!%p1250_p13), %s98_s26, 32768, %s100_s28, %s88_s30, %s1170_s16, %s1170_s16, %s1171_s20  }
  0x21   : > { %p108_p2 = pnand %p1009_p0, %p107_p1 }
  0x22   : > { %s1271_s21 = sand.u32 (!%p108_p2), 1, %s1160_s7  }
  0x23   : > { %111 = sbr.rel (%p108_p2) target bundleno = 319 (0x13f), region = 24  ;;  %s1010_s22 = sshll.u32 (!%p108_p2), %s1271_s21, 11 }
  0x24   : > { %s114_s23 = scalar_lea.sflag (!%p108_p2), [#allocation3], %s1271_s21  ;;  %s1275_s24 = scalar_lea.vmem (!%p108_p2), [#allocation2], %s1010_s22 }
  0x28   : > { %1147 = dma.done.wait (%p1228_p6), %s114_s23, 32768  }
  0x29   : > { %1149 = vsyncadd (%p1228_p6), %s114_s23, 4294934528  ;;  %v1172_v0 = vmov 0.5   ;;  %v139_v5 = vld [vmem:[%s1275_s24] sm:$0xff]  ;;  %v140_v7 = vld [vmem:[%s1275_s24 + $0x8] sm:$0xff]  ;;  %s1294_s17 = scalar_lea.vmem [#allocation5], %s1010_s22  ;;  %s1018_s25 = sshll.u32 %s1206_s10, 11 }
  0x2a   : > { %1070 = vrcp.f32 %v1172_v0  ;;  %v141_v8 = vld [vmem:[%s1275_s24 + $0x10] sm:$0xff]  ;;  %v142_v9 = vld [vmem:[%s1275_s24 + $0x18] sm:$0xff]  ;;  %v143_v11 = vld [vmem:[%s1275_s24 + $0x20] sm:$0xff]  ;;  %s926_s10 = scalar_lea.hbm %s2088_s1, %s1018_s25  ;;  %s927_s28 = sshll.u32 %s1294_s17, 4  ;;  %s928_s28 = int_to_ptr.vmem [resolvable:$true] %s927_s28 }
  0x2b   : > { %v144_v15 = vld [vmem:[%s1275_s24 + $0x28] sm:$0xff]  ;;  %v145_v17 = vld [vmem:[%s1275_s24 + $0x30] sm:$0xff]  ;;  %v146_v19 = vld [vmem:[%s1275_s24 + $0x38] sm:$0xff]  ;;  %s929_s29 = sshll.u32 %s926_s10, 4  ;;  %s915_s30 = scalar_lea.sflag [#allocation4], %s1271_s21  ;;  %s930_s29 = int_to_ptr.hbm [resolvable:$true] %s929_s29 }
  0x2c   : > { %v147_v21 = vld [vmem:[%s1275_s24 + $0x40] sm:$0xff]  ;;  %v148_v23 = vld [vmem:[%s1275_s24 + $0x48] sm:$0xff]  ;;  %v149_v25 = vld [vmem:[%s1275_s24 + $0x50] sm:$0xff]  ;;  %s1116_s2 = sshra.s32 %s930_s29, 4  ;;  %s1122_s11 = scalar_lea.hbm %s2088_s1, 4096  ;;  %s1117_s2 = int_to_ptr.hbm [resolvable:$true] %s1116_s2 }
  0x2d   : > { %v150_v27 = vld [vmem:[%s1275_s24 + $0x58] sm:$0xff]  ;;  %v151_v29 = vld [vmem:[%s1275_s24 + $0x60] sm:$0xff]  ;;  %v152_v31 = vld [vmem:[%s1275_s24 + $0x68] sm:$0xff]  ;;  %s1118_s3 = scalar_lea.hbm %s1117_s2, 2048  ;;  %p1123_p0 = scmp.lt.s32.totalorder %s1117_s2, %s2088_s1 }
  0x2e   : > { %v153_v33 = vld [vmem:[%s1275_s24 + $0x70] sm:$0xff]  ;;  %v154_v35 = vld [vmem:[%s1275_s24 + $0x78] sm:$0xff]  ;;  %v155_v37 = vld [vmem:[%s1275_s24 + $0x80] sm:$0xff]  ;;  %p1119_p6 = scmp.ne.s32.totalorder %s1117_s2, %s1118_s3  ;;  %p1124_p1 = scmp.lt.s32.totalorder %s1122_s11, %s1118_s3 }
  0x2f   : > { %v156_v39 = vld [vmem:[%s1275_s24 + $0x88] sm:$0xff]  ;;  %v157_v41 = vld [vmem:[%s1275_s24 + $0x90] sm:$0xff]  ;;  %v158_v43 = vld [vmem:[%s1275_s24 + $0x98] sm:$0xff] }
  0x30   : > { %v1071_v1 = vpop.eup %1070  ;;  %v159_v45 = vld [vmem:[%s1275_s24 + $0xa0] sm:$0xff]  ;;  %v160_v47 = vld [vmem:[%s1275_s24 + $0xa8] sm:$0xff]  ;;  %v161_v49 = vld [vmem:[%s1275_s24 + $0xb0] sm:$0xff]  ;;  %p1120_p9 = pnand %p1119_p6, %p1235_p11  ;;  %p1125_p3 = por %p1124_p1, %p1123_p0 }
  0x31   : > { %v396_v2 = vmul.f32 0.5, %v1071_v1  ;;  %vm400_vm0 = vweird.f32 %v1071_v1  ;;  %v162_v51 = vld [vmem:[%s1275_s24 + $0xb8] sm:$0xff]  ;;  %v163_v53 = vld [vmem:[%s1275_s24 + $0xc0] sm:$0xff]  ;;  %v164_v55 = vld [vmem:[%s1275_s24 + $0xc8] sm:$0xff] }
  0x32   : > { %v165_v57 = vld [vmem:[%s1275_s24 + $0xd0] sm:$0xff]  ;;  %v166_v59 = vld [vmem:[%s1275_s24 + $0xd8] sm:$0xff]  ;;  %v167_v61 = vld [vmem:[%s1275_s24 + $0xe0] sm:$0xff]  ;;  %p1121_p13 = pneg %p1120_p9 }
  0x33   : > { %v397_v3 = vsub.f32 1.0, %v396_v2  ;;  %v168_v63 = vld [vmem:[%s1275_s24 + $0xe8] sm:$0xff] }
  0x34   : > { %p1126_p4 = pnand %p1125_p3, %p1121_p13 }
  0x35   : > { %v398_v4 = vmul.f32 %v1071_v1, %v397_v3  ;;  %v170_v3 = vld [vmem:[%s1275_s24 + $0xf8] sm:$0xff] }
  0x37   : > { %v399_v6 = vadd.f32 %v1071_v1, %v398_v4 }
  0x39   : > { %v1285_v10 = vsel %vm400_vm0, %v1071_v1, %v399_v6  ;;  %v169_v1 = vld [vmem:[%s1275_s24 + $0xf0] sm:$0xff] }
  0x3a   : > { %v402_v12 = vmul.f32 %v1285_v10, %v139_v5  ;;  %v403_v13 = vmul.f32 %v1285_v10, %v140_v7  ;;  %v404_v14 = vmul.f32 %v1285_v10, %v141_v8  ;;  %v405_v16 = vmul.f32 %v1285_v10, %v142_v9  ;;  %v171_v5 = vld [vmem:[%s1275_s24 + $0x100] sm:$0xff]  ;;  %v172_v7 = vld [vmem:[%s1275_s24 + $0x108] sm:$0xff]  ;;  %v173_v9 = vld [vmem:[%s1275_s24 + $0x110] sm:$0xff] }
  0x3b   : > { %v406_v18 = vmul.f32 %v1285_v10, %v143_v11  ;;  %v407_v20 = vmul.f32 %v1285_v10, %v144_v15  ;;  %v408_v22 = vmul.f32 %v1285_v10, %v145_v17  ;;  %v409_v24 = vmul.f32 %v1285_v10, %v146_v19 }
  0x3c   : > { %658 = vst [vmem:[%s1294_s17] sm:$0xff] %v402_v12  ;;  %v410_v26 = vmul.f32 %v1285_v10, %v147_v21  ;;  %v411_v28 = vmul.f32 %v1285_v10, %v148_v23  ;;  %v412_v30 = vmul.f32 %v1285_v10, %v149_v25  ;;  %v413_v32 = vmul.f32 %v1285_v10, %v150_v27  ;;  %v174_v12 = vld [vmem:[%s1275_s24 + $0x118] sm:$0xff] }
  0x3d   : > { %659 = vst [vmem:[%s1294_s17 + $0x8] sm:$0xff] %v403_v13  ;;  %v414_v34 = vmul.f32 %v1285_v10, %v151_v29  ;;  %v415_v36 = vmul.f32 %v1285_v10, %v152_v31  ;;  %v416_v38 = vmul.f32 %v1285_v10, %v153_v33  ;;  %v417_v40 = vmul.f32 %v1285_v10, %v154_v35 }
  0x3e   : > { %660 = vst [vmem:[%s1294_s17 + $0x10] sm:$0xff] %v404_v14  ;;  %v418_v42 = vmul.f32 %v1285_v10, %v155_v37  ;;  %v419_v44 = vmul.f32 %v1285_v10, %v156_v39  ;;  %v420_v46 = vmul.f32 %v1285_v10, %v157_v41  ;;  %v421_v48 = vmul.f32 %v1285_v10, %v158_v43  ;;  %v175_v14 = vld [vmem:[%s1275_s24 + $0x120] sm:$0xff] }
  0x3f   : > { %661 = vst [vmem:[%s1294_s17 + $0x18] sm:$0xff] %v405_v16  ;;  %v422_v50 = vmul.f32 %v1285_v10, %v159_v45  ;;  %v423_v52 = vmul.f32 %v1285_v10, %v160_v47  ;;  %v424_v54 = vmul.f32 %v1285_v10, %v161_v49  ;;  %v425_v56 = vmul.f32 %v1285_v10, %v162_v51  ;;  %v176_v16 = vld [vmem:[%s1275_s24 + $0x128] sm:$0xff] }
  0x40   : > { %662 = vst [vmem:[%s1294_s17 + $0x20] sm:$0xff] %v406_v18  ;;  %v426_v58 = vmul.f32 %v1285_v10, %v163_v53  ;;  %v427_v60 = vmul.f32 %v1285_v10, %v164_v55  ;;  %v428_v62 = vmul.f32 %v1285_v10, %v165_v57  ;;  %v429_v0 = vmul.f32 %v1285_v10, %v166_v59  ;;  %v177_v18 = vld [vmem:[%s1275_s24 + $0x130] sm:$0xff] }
  0x41   : > { %663 = vst [vmem:[%s1294_s17 + $0x28] sm:$0xff] %v407_v20  ;;  %v430_v2 = vmul.f32 %v1285_v10, %v167_v61  ;;  %v431_v4 = vmul.f32 %v1285_v10, %v168_v63  ;;  %v432_v6 = vmul.f32 %v1285_v10, %v169_v1  ;;  %v433_v8 = vmul.f32 %v1285_v10, %v170_v3  ;;  %v178_v20 = vld [vmem:[%s1275_s24 + $0x138] sm:$0xff] }
  0x42   : > { %664 = vst [vmem:[%s1294_s17 + $0x30] sm:$0xff] %v408_v22  ;;  %v434_v11 = vmul.f32 %v1285_v10, %v171_v5  ;;  %v435_v13 = vmul.f32 %v1285_v10, %v172_v7  ;;  %v436_v15 = vmul.f32 %v1285_v10, %v173_v9  ;;  %v437_v17 = vmul.f32 %v1285_v10, %v174_v12  ;;  %v179_v22 = vld [vmem:[%s1275_s24 + $0x140] sm:$0xff] }
  0x43   : > { %665 = vst [vmem:[%s1294_s17 + $0x38] sm:$0xff] %v409_v24  ;;  %v438_v19 = vmul.f32 %v1285_v10, %v175_v14  ;;  %v439_v21 = vmul.f32 %v1285_v10, %v176_v16  ;;  %v440_v23 = vmul.f32 %v1285_v10, %v177_v18  ;;  %v180_v24 = vld [vmem:[%s1275_s24 + $0x148] sm:$0xff]  ;;  %v441_v25 = vmul.f32 %v1285_v10, %v178_v20 }
  0x44   : > { %666 = vst [vmem:[%s1294_s17 + $0x40] sm:$0xff] %v410_v26  ;;  %v181_v26 = vld [vmem:[%s1275_s24 + $0x150] sm:$0xff]  ;;  %v442_v27 = vmul.f32 %v1285_v10, %v179_v22  ;;  %v443_v29 = vmul.f32 %v1285_v10, %v180_v24 }
  0x45   : > { %667 = vst [vmem:[%s1294_s17 + $0x48] sm:$0xff] %v411_v28  ;;  %v182_v28 = vld [vmem:[%s1275_s24 + $0x158] sm:$0xff]  ;;  %v444_v31 = vmul.f32 %v1285_v10, %v181_v26 }
  0x46   : > { %668 = vst [vmem:[%s1294_s17 + $0x50] sm:$0xff] %v412_v30  ;;  %v183_v30 = vld [vmem:[%s1275_s24 + $0x160] sm:$0xff]  ;;  %v445_v33 = vmul.f32 %v1285_v10, %v182_v28 }
  0x47   : > { %669 = vst [vmem:[%s1294_s17 + $0x58] sm:$0xff] %v413_v32  ;;  %v184_v32 = vld [vmem:[%s1275_s24 + $0x168] sm:$0xff]  ;;  %v446_v35 = vmul.f32 %v1285_v10, %v183_v30 }
  0x48   : > { %670 = vst [vmem:[%s1294_s17 + $0x60] sm:$0xff] %v414_v34  ;;  %v185_v34 = vld [vmem:[%s1275_s24 + $0x170] sm:$0xff]  ;;  %v447_v37 = vmul.f32 %v1285_v10, %v184_v32 }
  0x49   : > { %671 = vst [vmem:[%s1294_s17 + $0x68] sm:$0xff] %v415_v36  ;;  %v186_v36 = vld [vmem:[%s1275_s24 + $0x178] sm:$0xff]  ;;  %v448_v39 = vmul.f32 %v1285_v10, %v185_v34 }
  0x4a   : > { %672 = vst [vmem:[%s1294_s17 + $0x70] sm:$0xff] %v416_v38  ;;  %v187_v38 = vld [vmem:[%s1275_s24 + $0x180] sm:$0xff]  ;;  %v449_v41 = vmul.f32 %v1285_v10, %v186_v36 }
  0x4b   : > { %673 = vst [vmem:[%s1294_s17 + $0x78] sm:$0xff] %v417_v40  ;;  %v188_v40 = vld [vmem:[%s1275_s24 + $0x188] sm:$0xff]  ;;  %v450_v43 = vmul.f32 %v1285_v10, %v187_v38 }
  0x4c   : > { %674 = vst [vmem:[%s1294_s17 + $0x80] sm:$0xff] %v418_v42  ;;  %v189_v42 = vld [vmem:[%s1275_s24 + $0x190] sm:$0xff]  ;;  %v451_v45 = vmul.f32 %v1285_v10, %v188_v40 }
  0x4d   : > { %675 = vst [vmem:[%s1294_s17 + $0x88] sm:$0xff] %v419_v44  ;;  %v190_v44 = vld [vmem:[%s1275_s24 + $0x198] sm:$0xff]  ;;  %v452_v47 = vmul.f32 %v1285_v10, %v189_v42 }
  0x4e   : > { %676 = vst [vmem:[%s1294_s17 + $0x90] sm:$0xff] %v420_v46  ;;  %v191_v46 = vld [vmem:[%s1275_s24 + $0x1a0] sm:$0xff]  ;;  %v453_v49 = vmul.f32 %v1285_v10, %v190_v44 }
  0x4f   : > { %677 = vst [vmem:[%s1294_s17 + $0x98] sm:$0xff] %v421_v48  ;;  %v192_v48 = vld [vmem:[%s1275_s24 + $0x1a8] sm:$0xff]  ;;  %v454_v51 = vmul.f32 %v1285_v10, %v191_v46 }
  0x50   : > { %678 = vst [vmem:[%s1294_s17 + $0xa0] sm:$0xff] %v422_v50  ;;  %v193_v50 = vld [vmem:[%s1275_s24 + $0x1b0] sm:$0xff]  ;;  %v455_v53 = vmul.f32 %v1285_v10, %v192_v48 }
  0x51   : > { %679 = vst [vmem:[%s1294_s17 + $0xa8] sm:$0xff] %v423_v52  ;;  %v194_v52 = vld [vmem:[%s1275_s24 + $0x1b8] sm:$0xff]  ;;  %v456_v55 = vmul.f32 %v1285_v10, %v193_v50 }
  0x52   : > { %680 = vst [vmem:[%s1294_s17 + $0xb0] sm:$0xff] %v424_v54  ;;  %v195_v54 = vld [vmem:[%s1275_s24 + $0x1c0] sm:$0xff]  ;;  %v457_v57 = vmul.f32 %v1285_v10, %v194_v52 }
  0x53   : > { %681 = vst [vmem:[%s1294_s17 + $0xb8] sm:$0xff] %v425_v56  ;;  %v196_v56 = vld [vmem:[%s1275_s24 + $0x1c8] sm:$0xff]  ;;  %v458_v59 = vmul.f32 %v1285_v10, %v195_v54 }
  0x54   : > { %682 = vst [vmem:[%s1294_s17 + $0xc0] sm:$0xff] %v426_v58  ;;  %v197_v58 = vld [vmem:[%s1275_s24 + $0x1d0] sm:$0xff]  ;;  %v459_v61 = vmul.f32 %v1285_v10, %v196_v56 }
  0x55   : > { %683 = vst [vmem:[%s1294_s17 + $0xc8] sm:$0xff] %v427_v60  ;;  %v198_v60 = vld [vmem:[%s1275_s24 + $0x1d8] sm:$0xff]  ;;  %v460_v63 = vmul.f32 %v1285_v10, %v197_v58 }
  0x56   : > { %684 = vst [vmem:[%s1294_s17 + $0xd0] sm:$0xff] %v428_v62  ;;  %v199_v62 = vld [vmem:[%s1275_s24 + $0x1e0] sm:$0xff]  ;;  %v461_v1 = vmul.f32 %v1285_v10, %v198_v60 }
  0x57   : > { %685 = vst [vmem:[%s1294_s17 + $0xd8] sm:$0xff] %v429_v0  ;;  %v200_v0 = vld [vmem:[%s1275_s24 + $0x1e8] sm:$0xff]  ;;  %v462_v3 = vmul.f32 %v1285_v10, %v199_v62 }
  0x58   : > { %686 = vst [vmem:[%s1294_s17 + $0xe0] sm:$0xff] %v430_v2  ;;  %v201_v2 = vld [vmem:[%s1275_s24 + $0x1f0] sm:$0xff]  ;;  %v463_v5 = vmul.f32 %v1285_v10, %v200_v0 }
  0x59   : > { %687 = vst [vmem:[%s1294_s17 + $0xe8] sm:$0xff] %v431_v4  ;;  %v202_v4 = vld [vmem:[%s1275_s24 + $0x1f8] sm:$0xff]  ;;  %v464_v7 = vmul.f32 %v1285_v10, %v201_v2 }
  0x5a   : > { %688 = vst [vmem:[%s1294_s17 + $0xf0] sm:$0xff] %v432_v6  ;;  %v203_v6 = vld [vmem:[%s1275_s24 + $0x200] sm:$0xff]  ;;  %v465_v9 = vmul.f32 %v1285_v10, %v202_v4 }
  0x5b   : > { %689 = vst [vmem:[%s1294_s17 + $0xf8] sm:$0xff] %v433_v8  ;;  %v204_v8 = vld [vmem:[%s1275_s24 + $0x208] sm:$0xff]  ;;  %v466_v12 = vmul.f32 %v1285_v10, %v203_v6 }
  0x5c   : > { %690 = vst [vmem:[%s1294_s17 + $0x100] sm:$0xff] %v434_v11  ;;  %v205_v11 = vld [vmem:[%s1275_s24 + $0x210] sm:$0xff]  ;;  %v467_v14 = vmul.f32 %v1285_v10, %v204_v8 }
  0x5d   : > { %691 = vst [vmem:[%s1294_s17 + $0x108] sm:$0xff] %v435_v13  ;;  %v206_v13 = vld [vmem:[%s1275_s24 + $0x218] sm:$0xff]  ;;  %v468_v16 = vmul.f32 %v1285_v10, %v205_v11 }
  0x5e   : > { %692 = vst [vmem:[%s1294_s17 + $0x110] sm:$0xff] %v436_v15  ;;  %v207_v15 = vld [vmem:[%s1275_s24 + $0x220] sm:$0xff]  ;;  %v469_v18 = vmul.f32 %v1285_v10, %v206_v13 }
  0x5f   : > { %693 = vst [vmem:[%s1294_s17 + $0x118] sm:$0xff] %v437_v17  ;;  %v208_v17 = vld [vmem:[%s1275_s24 + $0x228] sm:$0xff]  ;;  %v470_v20 = vmul.f32 %v1285_v10, %v207_v15 }
  0x60   : > { %694 = vst [vmem:[%s1294_s17 + $0x120] sm:$0xff] %v438_v19  ;;  %v209_v19 = vld [vmem:[%s1275_s24 + $0x230] sm:$0xff]  ;;  %v471_v22 = vmul.f32 %v1285_v10, %v208_v17 }
  0x61   : > { %695 = vst [vmem:[%s1294_s17 + $0x128] sm:$0xff] %v439_v21  ;;  %v210_v21 = vld [vmem:[%s1275_s24 + $0x238] sm:$0xff]  ;;  %v472_v24 = vmul.f32 %v1285_v10, %v209_v19 }
  0x62   : > { %696 = vst [vmem:[%s1294_s17 + $0x130] sm:$0xff] %v440_v23  ;;  %v211_v23 = vld [vmem:[%s1275_s24 + $0x240] sm:$0xff]  ;;  %v473_v26 = vmul.f32 %v1285_v10, %v210_v21 }
  0x63   : > { %697 = vst [vmem:[%s1294_s17 + $0x138] sm:$0xff] %v441_v25  ;;  %v212_v25 = vld [vmem:[%s1275_s24 + $0x248] sm:$0xff]  ;;  %v474_v28 = vmul.f32 %v1285_v10, %v211_v23 }
  0x64   : > { %698 = vst [vmem:[%s1294_s17 + $0x140] sm:$0xff] %v442_v27  ;;  %v213_v27 = vld [vmem:[%s1275_s24 + $0x250] sm:$0xff]  ;;  %v475_v30 = vmul.f32 %v1285_v10, %v212_v25 }
  0x65   : > { %699 = vst [vmem:[%s1294_s17 + $0x148] sm:$0xff] %v443_v29  ;;  %v214_v29 = vld [vmem:[%s1275_s24 + $0x258] sm:$0xff]  ;;  %v476_v32 = vmul.f32 %v1285_v10, %v213_v27 }
  0x66   : > { %700 = vst [vmem:[%s1294_s17 + $0x150] sm:$0xff] %v444_v31  ;;  %v215_v31 = vld [vmem:[%s1275_s24 + $0x260] sm:$0xff]  ;;  %v477_v34 = vmul.f32 %v1285_v10, %v214_v29 }
  0x67   : > { %701 = vst [vmem:[%s1294_s17 + $0x158] sm:$0xff] %v445_v33  ;;  %v216_v33 = vld [vmem:[%s1275_s24 + $0x268] sm:$0xff]  ;;  %v478_v36 = vmul.f32 %v1285_v10, %v215_v31 }
  0x68   : > { %702 = vst [vmem:[%s1294_s17 + $0x160] sm:$0xff] %v446_v35  ;;  %v217_v35 = vld [vmem:[%s1275_s24 + $0x270] sm:$0xff]  ;;  %v479_v38 = vmul.f32 %v1285_v10, %v216_v33 }
  0x69   : > { %703 = vst [vmem:[%s1294_s17 + $0x168] sm:$0xff] %v447_v37  ;;  %v218_v37 = vld [vmem:[%s1275_s24 + $0x278] sm:$0xff]  ;;  %v480_v40 = vmul.f32 %v1285_v10, %v217_v35 }
  0x6a   : > { %704 = vst [vmem:[%s1294_s17 + $0x170] sm:$0xff] %v448_v39  ;;  %v219_v39 = vld [vmem:[%s1275_s24 + $0x280] sm:$0xff]  ;;  %v481_v42 = vmul.f32 %v1285_v10, %v218_v37 }
  0x6b   : > { %705 = vst [vmem:[%s1294_s17 + $0x178] sm:$0xff] %v449_v41  ;;  %v220_v41 = vld [vmem:[%s1275_s24 + $0x288] sm:$0xff]  ;;  %v482_v44 = vmul.f32 %v1285_v10, %v219_v39 }
  0x6c   : > { %706 = vst [vmem:[%s1294_s17 + $0x180] sm:$0xff] %v450_v43  ;;  %v221_v43 = vld [vmem:[%s1275_s24 + $0x290] sm:$0xff]  ;;  %v483_v46 = vmul.f32 %v1285_v10, %v220_v41 }
  0x6d   : > { %707 = vst [vmem:[%s1294_s17 + $0x188] sm:$0xff] %v451_v45  ;;  %v222_v45 = vld [vmem:[%s1275_s24 + $0x298] sm:$0xff]  ;;  %v484_v48 = vmul.f32 %v1285_v10, %v221_v43 }
  0x6e   : > { %708 = vst [vmem:[%s1294_s17 + $0x190] sm:$0xff] %v452_v47  ;;  %v223_v47 = vld [vmem:[%s1275_s24 + $0x2a0] sm:$0xff]  ;;  %v485_v50 = vmul.f32 %v1285_v10, %v222_v45 }
  0x6f   : > { %709 = vst [vmem:[%s1294_s17 + $0x198] sm:$0xff] %v453_v49  ;;  %v224_v49 = vld [vmem:[%s1275_s24 + $0x2a8] sm:$0xff]  ;;  %v486_v52 = vmul.f32 %v1285_v10, %v223_v47 }
  0x70   : > { %710 = vst [vmem:[%s1294_s17 + $0x1a0] sm:$0xff] %v454_v51  ;;  %v225_v51 = vld [vmem:[%s1275_s24 + $0x2b0] sm:$0xff]  ;;  %v487_v54 = vmul.f32 %v1285_v10, %v224_v49 }
  0x71   : > { %711 = vst [vmem:[%s1294_s17 + $0x1a8] sm:$0xff] %v455_v53  ;;  %v226_v53 = vld [vmem:[%s1275_s24 + $0x2b8] sm:$0xff]  ;;  %v488_v56 = vmul.f32 %v1285_v10, %v225_v51 }
  0x72   : > { %712 = vst [vmem:[%s1294_s17 + $0x1b0] sm:$0xff] %v456_v55  ;;  %v227_v55 = vld [vmem:[%s1275_s24 + $0x2c0] sm:$0xff]  ;;  %v489_v58 = vmul.f32 %v1285_v10, %v226_v53 }
  0x73   : > { %713 = vst [vmem:[%s1294_s17 + $0x1b8] sm:$0xff] %v457_v57  ;;  %v228_v57 = vld [vmem:[%s1275_s24 + $0x2c8] sm:$0xff]  ;;  %v490_v60 = vmul.f32 %v1285_v10, %v227_v55 }
  0x74   : > { %714 = vst [vmem:[%s1294_s17 + $0x1c0] sm:$0xff] %v458_v59  ;;  %v229_v59 = vld [vmem:[%s1275_s24 + $0x2d0] sm:$0xff]  ;;  %v491_v62 = vmul.f32 %v1285_v10, %v228_v57 }
  0x75   : > { %715 = vst [vmem:[%s1294_s17 + $0x1c8] sm:$0xff] %v459_v61  ;;  %v230_v61 = vld [vmem:[%s1275_s24 + $0x2d8] sm:$0xff]  ;;  %v492_v0 = vmul.f32 %v1285_v10, %v229_v59 }
  0x76   : > { %716 = vst [vmem:[%s1294_s17 + $0x1d0] sm:$0xff] %v460_v63  ;;  %v231_v63 = vld [vmem:[%s1275_s24 + $0x2e0] sm:$0xff]  ;;  %v493_v2 = vmul.f32 %v1285_v10, %v230_v61 }
  0x77   : > { %717 = vst [vmem:[%s1294_s17 + $0x1d8] sm:$0xff] %v461_v1  ;;  %v232_v1 = vld [vmem:[%s1275_s24 + $0x2e8] sm:$0xff]  ;;  %v494_v4 = vmul.f32 %v1285_v10, %v231_v63 }
  0x78   : > { %718 = vst [vmem:[%s1294_s17 + $0x1e0] sm:$0xff] %v462_v3  ;;  %v233_v3 = vld [vmem:[%s1275_s24 + $0x2f0] sm:$0xff]  ;;  %v495_v6 = vmul.f32 %v1285_v10, %v232_v1 }
  0x79   : > { %719 = vst [vmem:[%s1294_s17 + $0x1e8] sm:$0xff] %v463_v5  ;;  %v234_v5 = vld [vmem:[%s1275_s24 + $0x2f8] sm:$0xff]  ;;  %v496_v8 = vmul.f32 %v1285_v10, %v233_v3 }
  0x7a   : > { %720 = vst [vmem:[%s1294_s17 + $0x1f0] sm:$0xff] %v464_v7  ;;  %v235_v7 = vld [vmem:[%s1275_s24 + $0x300] sm:$0xff]  ;;  %v497_v11 = vmul.f32 %v1285_v10, %v234_v5 }
  0x7b   : > { %721 = vst [vmem:[%s1294_s17 + $0x1f8] sm:$0xff] %v465_v9  ;;  %v236_v9 = vld [vmem:[%s1275_s24 + $0x308] sm:$0xff]  ;;  %v498_v13 = vmul.f32 %v1285_v10, %v235_v7 }
  0x7c   : > { %722 = vst [vmem:[%s1294_s17 + $0x200] sm:$0xff] %v466_v12  ;;  %v237_v12 = vld [vmem:[%s1275_s24 + $0x310] sm:$0xff]  ;;  %v499_v15 = vmul.f32 %v1285_v10, %v236_v9 }
  0x7d   : > { %723 = vst [vmem:[%s1294_s17 + $0x208] sm:$0xff] %v467_v14  ;;  %v238_v14 = vld [vmem:[%s1275_s24 + $0x318] sm:$0xff]  ;;  %v500_v17 = vmul.f32 %v1285_v10, %v237_v12 }
  0x7e   : > { %724 = vst [vmem:[%s1294_s17 + $0x210] sm:$0xff] %v468_v16  ;;  %v239_v16 = vld [vmem:[%s1275_s24 + $0x320] sm:$0xff]  ;;  %v501_v19 = vmul.f32 %v1285_v10, %v238_v14 }
  0x7f   : > { %725 = vst [vmem:[%s1294_s17 + $0x218] sm:$0xff] %v469_v18  ;;  %v240_v18 = vld [vmem:[%s1275_s24 + $0x328] sm:$0xff]  ;;  %v502_v21 = vmul.f32 %v1285_v10, %v239_v16 }
  0x80   : > { %726 = vst [vmem:[%s1294_s17 + $0x220] sm:$0xff] %v470_v20  ;;  %v241_v20 = vld [vmem:[%s1275_s24 + $0x330] sm:$0xff]  ;;  %v503_v23 = vmul.f32 %v1285_v10, %v240_v18 }
  0x81   : > { %727 = vst [vmem:[%s1294_s17 + $0x228] sm:$0xff] %v471_v22  ;;  %v242_v22 = vld [vmem:[%s1275_s24 + $0x338] sm:$0xff]  ;;  %v504_v25 = vmul.f32 %v1285_v10, %v241_v20 }
  0x82   : > { %728 = vst [vmem:[%s1294_s17 + $0x230] sm:$0xff] %v472_v24  ;;  %v243_v24 = vld [vmem:[%s1275_s24 + $0x340] sm:$0xff]  ;;  %v505_v27 = vmul.f32 %v1285_v10, %v242_v22 }
  0x83   : > { %729 = vst [vmem:[%s1294_s17 + $0x238] sm:$0xff] %v473_v26  ;;  %v244_v26 = vld [vmem:[%s1275_s24 + $0x348] sm:$0xff]  ;;  %v506_v29 = vmul.f32 %v1285_v10, %v243_v24 }
  0x84   : > { %730 = vst [vmem:[%s1294_s17 + $0x240] sm:$0xff] %v474_v28  ;;  %v245_v28 = vld [vmem:[%s1275_s24 + $0x350] sm:$0xff]  ;;  %v507_v31 = vmul.f32 %v1285_v10, %v244_v26 }
  0x85   : > { %731 = vst [vmem:[%s1294_s17 + $0x248] sm:$0xff] %v475_v30  ;;  %v246_v30 = vld [vmem:[%s1275_s24 + $0x358] sm:$0xff]  ;;  %v508_v33 = vmul.f32 %v1285_v10, %v245_v28 }
  0x86   : > { %732 = vst [vmem:[%s1294_s17 + $0x250] sm:$0xff] %v476_v32  ;;  %v247_v32 = vld [vmem:[%s1275_s24 + $0x360] sm:$0xff]  ;;  %v509_v35 = vmul.f32 %v1285_v10, %v246_v30 }
  0x87   : > { %733 = vst [vmem:[%s1294_s17 + $0x258] sm:$0xff] %v477_v34  ;;  %v248_v34 = vld [vmem:[%s1275_s24 + $0x368] sm:$0xff]  ;;  %v510_v37 = vmul.f32 %v1285_v10, %v247_v32 }
  0x88   : > { %734 = vst [vmem:[%s1294_s17 + $0x260] sm:$0xff] %v478_v36  ;;  %v249_v36 = vld [vmem:[%s1275_s24 + $0x370] sm:$0xff]  ;;  %v511_v39 = vmul.f32 %v1285_v10, %v248_v34 }
  0x89   : > { %735 = vst [vmem:[%s1294_s17 + $0x268] sm:$0xff] %v479_v38  ;;  %v250_v38 = vld [vmem:[%s1275_s24 + $0x378] sm:$0xff]  ;;  %v512_v41 = vmul.f32 %v1285_v10, %v249_v36 }
  0x8a   : > { %736 = vst [vmem:[%s1294_s17 + $0x270] sm:$0xff] %v480_v40  ;;  %v251_v40 = vld [vmem:[%s1275_s24 + $0x380] sm:$0xff]  ;;  %v513_v43 = vmul.f32 %v1285_v10, %v250_v38 }
  0x8b   : > { %737 = vst [vmem:[%s1294_s17 + $0x278] sm:$0xff] %v481_v42  ;;  %v252_v42 = vld [vmem:[%s1275_s24 + $0x388] sm:$0xff]  ;;  %v514_v45 = vmul.f32 %v1285_v10, %v251_v40 }
  0x8c   : > { %738 = vst [vmem:[%s1294_s17 + $0x280] sm:$0xff] %v482_v44  ;;  %v253_v44 = vld [vmem:[%s1275_s24 + $0x390] sm:$0xff]  ;;  %v515_v47 = vmul.f32 %v1285_v10, %v252_v42 }
  0x8d   : > { %739 = vst [vmem:[%s1294_s17 + $0x288] sm:$0xff] %v483_v46  ;;  %v254_v46 = vld [vmem:[%s1275_s24 + $0x398] sm:$0xff]  ;;  %v516_v49 = vmul.f32 %v1285_v10, %v253_v44 }
  0x8e   : > { %740 = vst [vmem:[%s1294_s17 + $0x290] sm:$0xff] %v484_v48  ;;  %v255_v48 = vld [vmem:[%s1275_s24 + $0x3a0] sm:$0xff]  ;;  %v517_v51 = vmul.f32 %v1285_v10, %v254_v46 }
  0x8f   : > { %741 = vst [vmem:[%s1294_s17 + $0x298] sm:$0xff] %v485_v50  ;;  %v256_v50 = vld [vmem:[%s1275_s24 + $0x3a8] sm:$0xff]  ;;  %v518_v53 = vmul.f32 %v1285_v10, %v255_v48 }
  0x90   : > { %742 = vst [vmem:[%s1294_s17 + $0x2a0] sm:$0xff] %v486_v52  ;;  %v257_v52 = vld [vmem:[%s1275_s24 + $0x3b0] sm:$0xff]  ;;  %v519_v55 = vmul.f32 %v1285_v10, %v256_v50 }
  0x91   : > { %743 = vst [vmem:[%s1294_s17 + $0x2a8] sm:$0xff] %v487_v54  ;;  %v258_v54 = vld [vmem:[%s1275_s24 + $0x3b8] sm:$0xff]  ;;  %v520_v57 = vmul.f32 %v1285_v10, %v257_v52 }
  0x92   : > { %744 = vst [vmem:[%s1294_s17 + $0x2b0] sm:$0xff] %v488_v56  ;;  %v259_v56 = vld [vmem:[%s1275_s24 + $0x3c0] sm:$0xff]  ;;  %v521_v59 = vmul.f32 %v1285_v10, %v258_v54 }
  0x93   : > { %745 = vst [vmem:[%s1294_s17 + $0x2b8] sm:$0xff] %v489_v58  ;;  %v260_v58 = vld [vmem:[%s1275_s24 + $0x3c8] sm:$0xff]  ;;  %v522_v61 = vmul.f32 %v1285_v10, %v259_v56 }
  0x94   : > { %746 = vst [vmem:[%s1294_s17 + $0x2c0] sm:$0xff] %v490_v60  ;;  %v261_v60 = vld [vmem:[%s1275_s24 + $0x3d0] sm:$0xff]  ;;  %v523_v63 = vmul.f32 %v1285_v10, %v260_v58 }
  0x95   : > { %747 = vst [vmem:[%s1294_s17 + $0x2c8] sm:$0xff] %v491_v62  ;;  %v262_v62 = vld [vmem:[%s1275_s24 + $0x3d8] sm:$0xff]  ;;  %v524_v1 = vmul.f32 %v1285_v10, %v261_v60 }
  0x96   : > { %748 = vst [vmem:[%s1294_s17 + $0x2d0] sm:$0xff] %v492_v0  ;;  %v263_v0 = vld [vmem:[%s1275_s24 + $0x3e0] sm:$0xff]  ;;  %v525_v3 = vmul.f32 %v1285_v10, %v262_v62 }
  0x97   : > { %749 = vst [vmem:[%s1294_s17 + $0x2d8] sm:$0xff] %v493_v2  ;;  %v264_v2 = vld [vmem:[%s1275_s24 + $0x3e8] sm:$0xff]  ;;  %v526_v5 = vmul.f32 %v1285_v10, %v263_v0 }
  0x98   : > { %750 = vst [vmem:[%s1294_s17 + $0x2e0] sm:$0xff] %v494_v4  ;;  %v265_v4 = vld [vmem:[%s1275_s24 + $0x3f0] sm:$0xff]  ;;  %v527_v7 = vmul.f32 %v1285_v10, %v264_v2 }
  0x99   : > { %751 = vst [vmem:[%s1294_s17 + $0x2e8] sm:$0xff] %v495_v6  ;;  %v266_v6 = vld [vmem:[%s1275_s24 + $0x3f8] sm:$0xff]  ;;  %v528_v9 = vmul.f32 %v1285_v10, %v265_v4 }
  0x9a   : > { %752 = vst [vmem:[%s1294_s17 + $0x2f0] sm:$0xff] %v496_v8  ;;  %v267_v8 = vld [vmem:[%s1275_s24 + $0x400] sm:$0xff]  ;;  %v529_v12 = vmul.f32 %v1285_v10, %v266_v6 }
  0x9b   : > { %753 = vst [vmem:[%s1294_s17 + $0x2f8] sm:$0xff] %v497_v11  ;;  %v268_v11 = vld [vmem:[%s1275_s24 + $0x408] sm:$0xff]  ;;  %v530_v14 = vmul.f32 %v1285_v10, %v267_v8 }
  0x9c   : > { %754 = vst [vmem:[%s1294_s17 + $0x300] sm:$0xff] %v498_v13  ;;  %v269_v13 = vld [vmem:[%s1275_s24 + $0x410] sm:$0xff]  ;;  %v531_v16 = vmul.f32 %v1285_v10, %v268_v11 }
  0x9d   : > { %755 = vst [vmem:[%s1294_s17 + $0x308] sm:$0xff] %v499_v15  ;;  %v270_v15 = vld [vmem:[%s1275_s24 + $0x418] sm:$0xff]  ;;  %v532_v18 = vmul.f32 %v1285_v10, %v269_v13 }
  0x9e   : > { %756 = vst [vmem:[%s1294_s17 + $0x310] sm:$0xff] %v500_v17  ;;  %v271_v17 = vld [vmem:[%s1275_s24 + $0x420] sm:$0xff]  ;;  %v533_v20 = vmul.f32 %v1285_v10, %v270_v15 }
  0x9f   : > { %757 = vst [vmem:[%s1294_s17 + $0x318] sm:$0xff] %v501_v19  ;;  %v272_v19 = vld [vmem:[%s1275_s24 + $0x428] sm:$0xff]  ;;  %v534_v22 = vmul.f32 %v1285_v10, %v271_v17 }
  0xa0   : > { %758 = vst [vmem:[%s1294_s17 + $0x320] sm:$0xff] %v502_v21  ;;  %v273_v21 = vld [vmem:[%s1275_s24 + $0x430] sm:$0xff]  ;;  %v535_v24 = vmul.f32 %v1285_v10, %v272_v19 }
  0xa1   : > { %759 = vst [vmem:[%s1294_s17 + $0x328] sm:$0xff] %v503_v23  ;;  %v274_v23 = vld [vmem:[%s1275_s24 + $0x438] sm:$0xff]  ;;  %v536_v26 = vmul.f32 %v1285_v10, %v273_v21 }
  0xa2   : > { %760 = vst [vmem:[%s1294_s17 + $0x330] sm:$0xff] %v504_v25  ;;  %v275_v25 = vld [vmem:[%s1275_s24 + $0x440] sm:$0xff]  ;;  %v537_v28 = vmul.f32 %v1285_v10, %v274_v23 }
  0xa3   : > { %761 = vst [vmem:[%s1294_s17 + $0x338] sm:$0xff] %v505_v27  ;;  %v276_v27 = vld [vmem:[%s1275_s24 + $0x448] sm:$0xff]  ;;  %v538_v30 = vmul.f32 %v1285_v10, %v275_v25 }
  0xa4   : > { %762 = vst [vmem:[%s1294_s17 + $0x340] sm:$0xff] %v506_v29  ;;  %v277_v29 = vld [vmem:[%s1275_s24 + $0x450] sm:$0xff]  ;;  %v539_v32 = vmul.f32 %v1285_v10, %v276_v27 }
  0xa5   : > { %763 = vst [vmem:[%s1294_s17 + $0x348] sm:$0xff] %v507_v31  ;;  %v278_v31 = vld [vmem:[%s1275_s24 + $0x458] sm:$0xff]  ;;  %v540_v34 = vmul.f32 %v1285_v10, %v277_v29 }
  0xa6   : > { %764 = vst [vmem:[%s1294_s17 + $0x350] sm:$0xff] %v508_v33  ;;  %v279_v33 = vld [vmem:[%s1275_s24 + $0x460] sm:$0xff]  ;;  %v541_v36 = vmul.f32 %v1285_v10, %v278_v31 }
  0xa7   : > { %765 = vst [vmem:[%s1294_s17 + $0x358] sm:$0xff] %v509_v35  ;;  %v280_v35 = vld [vmem:[%s1275_s24 + $0x468] sm:$0xff]  ;;  %v542_v38 = vmul.f32 %v1285_v10, %v279_v33 }
  0xa8   : > { %766 = vst [vmem:[%s1294_s17 + $0x360] sm:$0xff] %v510_v37  ;;  %v281_v37 = vld [vmem:[%s1275_s24 + $0x470] sm:$0xff]  ;;  %v543_v40 = vmul.f32 %v1285_v10, %v280_v35 }
  0xa9   : > { %767 = vst [vmem:[%s1294_s17 + $0x368] sm:$0xff] %v511_v39  ;;  %v282_v39 = vld [vmem:[%s1275_s24 + $0x478] sm:$0xff]  ;;  %v544_v42 = vmul.f32 %v1285_v10, %v281_v37 }
  0xaa   : > { %768 = vst [vmem:[%s1294_s17 + $0x370] sm:$0xff] %v512_v41  ;;  %v283_v41 = vld [vmem:[%s1275_s24 + $0x480] sm:$0xff]  ;;  %v545_v44 = vmul.f32 %v1285_v10, %v282_v39 }
  0xab   : > { %769 = vst [vmem:[%s1294_s17 + $0x378] sm:$0xff] %v513_v43  ;;  %v284_v43 = vld [vmem:[%s1275_s24 + $0x488] sm:$0xff]  ;;  %v546_v46 = vmul.f32 %v1285_v10, %v283_v41 }
  0xac   : > { %770 = vst [vmem:[%s1294_s17 + $0x380] sm:$0xff] %v514_v45  ;;  %v285_v45 = vld [vmem:[%s1275_s24 + $0x490] sm:$0xff]  ;;  %v547_v48 = vmul.f32 %v1285_v10, %v284_v43 }
  0xad   : > { %771 = vst [vmem:[%s1294_s17 + $0x388] sm:$0xff] %v515_v47  ;;  %v286_v47 = vld [vmem:[%s1275_s24 + $0x498] sm:$0xff]  ;;  %v548_v50 = vmul.f32 %v1285_v10, %v285_v45 }
  0xae   : > { %772 = vst [vmem:[%s1294_s17 + $0x390] sm:$0xff] %v516_v49  ;;  %v287_v49 = vld [vmem:[%s1275_s24 + $0x4a0] sm:$0xff]  ;;  %v549_v52 = vmul.f32 %v1285_v10, %v286_v47 }
  0xaf   : > { %773 = vst [vmem:[%s1294_s17 + $0x398] sm:$0xff] %v517_v51  ;;  %v288_v51 = vld [vmem:[%s1275_s24 + $0x4a8] sm:$0xff]  ;;  %v550_v54 = vmul.f32 %v1285_v10, %v287_v49 }
  0xb0   : > { %774 = vst [vmem:[%s1294_s17 + $0x3a0] sm:$0xff] %v518_v53  ;;  %v289_v53 = vld [vmem:[%s1275_s24 + $0x4b0] sm:$0xff]  ;;  %v551_v56 = vmul.f32 %v1285_v10, %v288_v51 }
  0xb1   : > { %775 = vst [vmem:[%s1294_s17 + $0x3a8] sm:$0xff] %v519_v55  ;;  %v290_v55 = vld [vmem:[%s1275_s24 + $0x4b8] sm:$0xff]  ;;  %v552_v58 = vmul.f32 %v1285_v10, %v289_v53 }
  0xb2   : > { %776 = vst [vmem:[%s1294_s17 + $0x3b0] sm:$0xff] %v520_v57  ;;  %v291_v57 = vld [vmem:[%s1275_s24 + $0x4c0] sm:$0xff]  ;;  %v553_v60 = vmul.f32 %v1285_v10, %v290_v55 }
  0xb3   : > { %777 = vst [vmem:[%s1294_s17 + $0x3b8] sm:$0xff] %v521_v59  ;;  %v292_v59 = vld [vmem:[%s1275_s24 + $0x4c8] sm:$0xff]  ;;  %v554_v62 = vmul.f32 %v1285_v10, %v291_v57 }
  0xb4   : > { %778 = vst [vmem:[%s1294_s17 + $0x3c0] sm:$0xff] %v522_v61  ;;  %v293_v61 = vld [vmem:[%s1275_s24 + $0x4d0] sm:$0xff]  ;;  %v555_v0 = vmul.f32 %v1285_v10, %v292_v59 }
  0xb5   : > { %779 = vst [vmem:[%s1294_s17 + $0x3c8] sm:$0xff] %v523_v63  ;;  %v294_v63 = vld [vmem:[%s1275_s24 + $0x4d8] sm:$0xff]  ;;  %v556_v2 = vmul.f32 %v1285_v10, %v293_v61 }
  0xb6   : > { %780 = vst [vmem:[%s1294_s17 + $0x3d0] sm:$0xff] %v524_v1  ;;  %v295_v1 = vld [vmem:[%s1275_s24 + $0x4e0] sm:$0xff]  ;;  %v557_v4 = vmul.f32 %v1285_v10, %v294_v63 }
  0xb7   : > { %781 = vst [vmem:[%s1294_s17 + $0x3d8] sm:$0xff] %v525_v3  ;;  %v296_v3 = vld [vmem:[%s1275_s24 + $0x4e8] sm:$0xff]  ;;  %v558_v6 = vmul.f32 %v1285_v10, %v295_v1 }
  0xb8   : > { %782 = vst [vmem:[%s1294_s17 + $0x3e0] sm:$0xff] %v526_v5  ;;  %v297_v5 = vld [vmem:[%s1275_s24 + $0x4f0] sm:$0xff]  ;;  %v559_v8 = vmul.f32 %v1285_v10, %v296_v3 }
  0xb9   : > { %783 = vst [vmem:[%s1294_s17 + $0x3e8] sm:$0xff] %v527_v7  ;;  %v298_v7 = vld [vmem:[%s1275_s24 + $0x4f8] sm:$0xff]  ;;  %v560_v11 = vmul.f32 %v1285_v10, %v297_v5 }
  0xba   : > { %784 = vst [vmem:[%s1294_s17 + $0x3f0] sm:$0xff] %v528_v9  ;;  %v299_v9 = vld [vmem:[%s1275_s24 + $0x500] sm:$0xff]  ;;  %v561_v13 = vmul.f32 %v1285_v10, %v298_v7 }
  0xbb   : > { %785 = vst [vmem:[%s1294_s17 + $0x3f8] sm:$0xff] %v529_v12  ;;  %v300_v12 = vld [vmem:[%s1275_s24 + $0x508] sm:$0xff]  ;;  %v562_v15 = vmul.f32 %v1285_v10, %v299_v9 }
  0xbc   : > { %786 = vst [vmem:[%s1294_s17 + $0x400] sm:$0xff] %v530_v14  ;;  %v301_v14 = vld [vmem:[%s1275_s24 + $0x510] sm:$0xff]  ;;  %v563_v17 = vmul.f32 %v1285_v10, %v300_v12 }
  0xbd   : > { %787 = vst [vmem:[%s1294_s17 + $0x408] sm:$0xff] %v531_v16  ;;  %v302_v16 = vld [vmem:[%s1275_s24 + $0x518] sm:$0xff]  ;;  %v564_v19 = vmul.f32 %v1285_v10, %v301_v14 }
  0xbe   : > { %788 = vst [vmem:[%s1294_s17 + $0x410] sm:$0xff] %v532_v18  ;;  %v303_v18 = vld [vmem:[%s1275_s24 + $0x520] sm:$0xff]  ;;  %v565_v21 = vmul.f32 %v1285_v10, %v302_v16 }
  0xbf   : > { %789 = vst [vmem:[%s1294_s17 + $0x418] sm:$0xff] %v533_v20  ;;  %v304_v20 = vld [vmem:[%s1275_s24 + $0x528] sm:$0xff]  ;;  %v566_v23 = vmul.f32 %v1285_v10, %v303_v18 }
  0xc0   : > { %790 = vst [vmem:[%s1294_s17 + $0x420] sm:$0xff] %v534_v22  ;;  %v305_v22 = vld [vmem:[%s1275_s24 + $0x530] sm:$0xff]  ;;  %v567_v25 = vmul.f32 %v1285_v10, %v304_v20 }
  0xc1   : > { %791 = vst [vmem:[%s1294_s17 + $0x428] sm:$0xff] %v535_v24  ;;  %v306_v24 = vld [vmem:[%s1275_s24 + $0x538] sm:$0xff]  ;;  %v568_v27 = vmul.f32 %v1285_v10, %v305_v22 }
  0xc2   : > { %792 = vst [vmem:[%s1294_s17 + $0x430] sm:$0xff] %v536_v26  ;;  %v307_v26 = vld [vmem:[%s1275_s24 + $0x540] sm:$0xff]  ;;  %v569_v29 = vmul.f32 %v1285_v10, %v306_v24 }
  0xc3   : > { %793 = vst [vmem:[%s1294_s17 + $0x438] sm:$0xff] %v537_v28  ;;  %v308_v28 = vld [vmem:[%s1275_s24 + $0x548] sm:$0xff]  ;;  %v570_v31 = vmul.f32 %v1285_v10, %v307_v26 }
  0xc4   : > { %794 = vst [vmem:[%s1294_s17 + $0x440] sm:$0xff] %v538_v30  ;;  %v309_v30 = vld [vmem:[%s1275_s24 + $0x550] sm:$0xff]  ;;  %v571_v33 = vmul.f32 %v1285_v10, %v308_v28 }
  0xc5   : > { %795 = vst [vmem:[%s1294_s17 + $0x448] sm:$0xff] %v539_v32  ;;  %v310_v32 = vld [vmem:[%s1275_s24 + $0x558] sm:$0xff]  ;;  %v572_v35 = vmul.f32 %v1285_v10, %v309_v30 }
  0xc6   : > { %796 = vst [vmem:[%s1294_s17 + $0x450] sm:$0xff] %v540_v34  ;;  %v311_v34 = vld [vmem:[%s1275_s24 + $0x560] sm:$0xff]  ;;  %v573_v37 = vmul.f32 %v1285_v10, %v310_v32 }
  0xc7   : > { %797 = vst [vmem:[%s1294_s17 + $0x458] sm:$0xff] %v541_v36  ;;  %v312_v36 = vld [vmem:[%s1275_s24 + $0x568] sm:$0xff]  ;;  %v574_v39 = vmul.f32 %v1285_v10, %v311_v34 }
  0xc8   : > { %798 = vst [vmem:[%s1294_s17 + $0x460] sm:$0xff] %v542_v38  ;;  %v313_v38 = vld [vmem:[%s1275_s24 + $0x570] sm:$0xff]  ;;  %v575_v41 = vmul.f32 %v1285_v10, %v312_v36 }
  0xc9   : > { %799 = vst [vmem:[%s1294_s17 + $0x468] sm:$0xff] %v543_v40  ;;  %v314_v40 = vld [vmem:[%s1275_s24 + $0x578] sm:$0xff]  ;;  %v576_v43 = vmul.f32 %v1285_v10, %v313_v38 }
  0xca   : > { %800 = vst [vmem:[%s1294_s17 + $0x470] sm:$0xff] %v544_v42  ;;  %v315_v42 = vld [vmem:[%s1275_s24 + $0x580] sm:$0xff]  ;;  %v577_v45 = vmul.f32 %v1285_v10, %v314_v40 }
  0xcb   : > { %801 = vst [vmem:[%s1294_s17 + $0x478] sm:$0xff] %v545_v44  ;;  %v316_v44 = vld [vmem:[%s1275_s24 + $0x588] sm:$0xff]  ;;  %v578_v47 = vmul.f32 %v1285_v10, %v315_v42 }
  0xcc   : > { %802 = vst [vmem:[%s1294_s17 + $0x480] sm:$0xff] %v546_v46  ;;  %v317_v46 = vld [vmem:[%s1275_s24 + $0x590] sm:$0xff]  ;;  %v579_v49 = vmul.f32 %v1285_v10, %v316_v44 }
  0xcd   : > { %803 = vst [vmem:[%s1294_s17 + $0x488] sm:$0xff] %v547_v48  ;;  %v318_v48 = vld [vmem:[%s1275_s24 + $0x598] sm:$0xff]  ;;  %v580_v51 = vmul.f32 %v1285_v10, %v317_v46 }
  0xce   : > { %804 = vst [vmem:[%s1294_s17 + $0x490] sm:$0xff] %v548_v50  ;;  %v319_v50 = vld [vmem:[%s1275_s24 + $0x5a0] sm:$0xff]  ;;  %v581_v53 = vmul.f32 %v1285_v10, %v318_v48 }
  0xcf   : > { %805 = vst [vmem:[%s1294_s17 + $0x498] sm:$0xff] %v549_v52  ;;  %v320_v52 = vld [vmem:[%s1275_s24 + $0x5a8] sm:$0xff]  ;;  %v582_v55 = vmul.f32 %v1285_v10, %v319_v50 }
  0xd0   : > { %806 = vst [vmem:[%s1294_s17 + $0x4a0] sm:$0xff] %v550_v54  ;;  %v321_v54 = vld [vmem:[%s1275_s24 + $0x5b0] sm:$0xff]  ;;  %v583_v57 = vmul.f32 %v1285_v10, %v320_v52 }
  0xd1   : > { %807 = vst [vmem:[%s1294_s17 + $0x4a8] sm:$0xff] %v551_v56  ;;  %v322_v56 = vld [vmem:[%s1275_s24 + $0x5b8] sm:$0xff]  ;;  %v584_v59 = vmul.f32 %v1285_v10, %v321_v54 }
  0xd2   : > { %808 = vst [vmem:[%s1294_s17 + $0x4b0] sm:$0xff] %v552_v58  ;;  %v323_v58 = vld [vmem:[%s1275_s24 + $0x5c0] sm:$0xff]  ;;  %v585_v61 = vmul.f32 %v1285_v10, %v322_v56 }
  0xd3   : > { %809 = vst [vmem:[%s1294_s17 + $0x4b8] sm:$0xff] %v553_v60  ;;  %v324_v60 = vld [vmem:[%s1275_s24 + $0x5c8] sm:$0xff]  ;;  %v586_v63 = vmul.f32 %v1285_v10, %v323_v58 }
  0xd4   : > { %810 = vst [vmem:[%s1294_s17 + $0x4c0] sm:$0xff] %v554_v62  ;;  %v325_v62 = vld [vmem:[%s1275_s24 + $0x5d0] sm:$0xff]  ;;  %v587_v1 = vmul.f32 %v1285_v10, %v324_v60 }
  0xd5   : > { %811 = vst [vmem:[%s1294_s17 + $0x4c8] sm:$0xff] %v555_v0  ;;  %v326_v0 = vld [vmem:[%s1275_s24 + $0x5d8] sm:$0xff]  ;;  %v588_v3 = vmul.f32 %v1285_v10, %v325_v62 }
  0xd6   : > { %812 = vst [vmem:[%s1294_s17 + $0x4d0] sm:$0xff] %v556_v2  ;;  %v327_v2 = vld [vmem:[%s1275_s24 + $0x5e0] sm:$0xff]  ;;  %v589_v5 = vmul.f32 %v1285_v10, %v326_v0 }
  0xd7   : > { %813 = vst [vmem:[%s1294_s17 + $0x4d8] sm:$0xff] %v557_v4  ;;  %v328_v4 = vld [vmem:[%s1275_s24 + $0x5e8] sm:$0xff]  ;;  %v590_v7 = vmul.f32 %v1285_v10, %v327_v2 }
  0xd8   : > { %814 = vst [vmem:[%s1294_s17 + $0x4e0] sm:$0xff] %v558_v6  ;;  %v329_v6 = vld [vmem:[%s1275_s24 + $0x5f0] sm:$0xff]  ;;  %v591_v9 = vmul.f32 %v1285_v10, %v328_v4 }
  0xd9   : > { %815 = vst [vmem:[%s1294_s17 + $0x4e8] sm:$0xff] %v559_v8  ;;  %v330_v8 = vld [vmem:[%s1275_s24 + $0x5f8] sm:$0xff]  ;;  %v592_v12 = vmul.f32 %v1285_v10, %v329_v6 }
  0xda   : > { %816 = vst [vmem:[%s1294_s17 + $0x4f0] sm:$0xff] %v560_v11  ;;  %v331_v11 = vld [vmem:[%s1275_s24 + $0x600] sm:$0xff]  ;;  %v593_v14 = vmul.f32 %v1285_v10, %v330_v8 }
  0xdb   : > { %817 = vst [vmem:[%s1294_s17 + $0x4f8] sm:$0xff] %v561_v13  ;;  %v332_v13 = vld [vmem:[%s1275_s24 + $0x608] sm:$0xff]  ;;  %v594_v16 = vmul.f32 %v1285_v10, %v331_v11 }
  0xdc   : > { %818 = vst [vmem:[%s1294_s17 + $0x500] sm:$0xff] %v562_v15  ;;  %v333_v15 = vld [vmem:[%s1275_s24 + $0x610] sm:$0xff]  ;;  %v595_v18 = vmul.f32 %v1285_v10, %v332_v13 }
  0xdd   : > { %819 = vst [vmem:[%s1294_s17 + $0x508] sm:$0xff] %v563_v17  ;;  %v334_v17 = vld [vmem:[%s1275_s24 + $0x618] sm:$0xff]  ;;  %v596_v20 = vmul.f32 %v1285_v10, %v333_v15 }
  0xde   : > { %820 = vst [vmem:[%s1294_s17 + $0x510] sm:$0xff] %v564_v19  ;;  %v335_v19 = vld [vmem:[%s1275_s24 + $0x620] sm:$0xff]  ;;  %v597_v22 = vmul.f32 %v1285_v10, %v334_v17 }
  0xdf   : > { %821 = vst [vmem:[%s1294_s17 + $0x518] sm:$0xff] %v565_v21  ;;  %v336_v21 = vld [vmem:[%s1275_s24 + $0x628] sm:$0xff]  ;;  %v598_v24 = vmul.f32 %v1285_v10, %v335_v19 }
  0xe0   : > { %822 = vst [vmem:[%s1294_s17 + $0x520] sm:$0xff] %v566_v23  ;;  %v337_v23 = vld [vmem:[%s1275_s24 + $0x630] sm:$0xff]  ;;  %v599_v26 = vmul.f32 %v1285_v10, %v336_v21 }
  0xe1   : > { %823 = vst [vmem:[%s1294_s17 + $0x528] sm:$0xff] %v567_v25  ;;  %v338_v25 = vld [vmem:[%s1275_s24 + $0x638] sm:$0xff]  ;;  %v600_v28 = vmul.f32 %v1285_v10, %v337_v23 }
  0xe2   : > { %824 = vst [vmem:[%s1294_s17 + $0x530] sm:$0xff] %v568_v27  ;;  %v339_v27 = vld [vmem:[%s1275_s24 + $0x640] sm:$0xff]  ;;  %v601_v30 = vmul.f32 %v1285_v10, %v338_v25 }
  0xe3   : > { %825 = vst [vmem:[%s1294_s17 + $0x538] sm:$0xff] %v569_v29  ;;  %v340_v29 = vld [vmem:[%s1275_s24 + $0x648] sm:$0xff]  ;;  %v602_v32 = vmul.f32 %v1285_v10, %v339_v27 }
  0xe4   : > { %826 = vst [vmem:[%s1294_s17 + $0x540] sm:$0xff] %v570_v31  ;;  %v341_v31 = vld [vmem:[%s1275_s24 + $0x650] sm:$0xff]  ;;  %v603_v34 = vmul.f32 %v1285_v10, %v340_v29 }
  0xe5   : > { %827 = vst [vmem:[%s1294_s17 + $0x548] sm:$0xff] %v571_v33  ;;  %v342_v33 = vld [vmem:[%s1275_s24 + $0x658] sm:$0xff]  ;;  %v604_v36 = vmul.f32 %v1285_v10, %v341_v31 }
  0xe6   : > { %828 = vst [vmem:[%s1294_s17 + $0x550] sm:$0xff] %v572_v35  ;;  %v343_v35 = vld [vmem:[%s1275_s24 + $0x660] sm:$0xff]  ;;  %v605_v38 = vmul.f32 %v1285_v10, %v342_v33 }
  0xe7   : > { %829 = vst [vmem:[%s1294_s17 + $0x558] sm:$0xff] %v573_v37  ;;  %v344_v37 = vld [vmem:[%s1275_s24 + $0x668] sm:$0xff]  ;;  %v606_v40 = vmul.f32 %v1285_v10, %v343_v35 }
  0xe8   : > { %830 = vst [vmem:[%s1294_s17 + $0x560] sm:$0xff] %v574_v39  ;;  %v345_v39 = vld [vmem:[%s1275_s24 + $0x670] sm:$0xff]  ;;  %v607_v42 = vmul.f32 %v1285_v10, %v344_v37 }
  0xe9   : > { %831 = vst [vmem:[%s1294_s17 + $0x568] sm:$0xff] %v575_v41  ;;  %v346_v41 = vld [vmem:[%s1275_s24 + $0x678] sm:$0xff]  ;;  %v608_v44 = vmul.f32 %v1285_v10, %v345_v39 }
  0xea   : > { %832 = vst [vmem:[%s1294_s17 + $0x570] sm:$0xff] %v576_v43  ;;  %v347_v43 = vld [vmem:[%s1275_s24 + $0x680] sm:$0xff]  ;;  %v609_v46 = vmul.f32 %v1285_v10, %v346_v41 }
  0xeb   : > { %833 = vst [vmem:[%s1294_s17 + $0x578] sm:$0xff] %v577_v45  ;;  %v348_v45 = vld [vmem:[%s1275_s24 + $0x688] sm:$0xff]  ;;  %v610_v48 = vmul.f32 %v1285_v10, %v347_v43 }
  0xec   : > { %834 = vst [vmem:[%s1294_s17 + $0x580] sm:$0xff] %v578_v47  ;;  %v349_v47 = vld [vmem:[%s1275_s24 + $0x690] sm:$0xff]  ;;  %v611_v50 = vmul.f32 %v1285_v10, %v348_v45 }
  0xed   : > { %835 = vst [vmem:[%s1294_s17 + $0x588] sm:$0xff] %v579_v49  ;;  %v350_v49 = vld [vmem:[%s1275_s24 + $0x698] sm:$0xff]  ;;  %v612_v52 = vmul.f32 %v1285_v10, %v349_v47 }
  0xee   : > { %836 = vst [vmem:[%s1294_s17 + $0x590] sm:$0xff] %v580_v51  ;;  %v351_v51 = vld [vmem:[%s1275_s24 + $0x6a0] sm:$0xff]  ;;  %v613_v54 = vmul.f32 %v1285_v10, %v350_v49 }
  0xef   : > { %837 = vst [vmem:[%s1294_s17 + $0x598] sm:$0xff] %v581_v53  ;;  %v352_v53 = vld [vmem:[%s1275_s24 + $0x6a8] sm:$0xff]  ;;  %v614_v56 = vmul.f32 %v1285_v10, %v351_v51 }
  0xf0   : > { %838 = vst [vmem:[%s1294_s17 + $0x5a0] sm:$0xff] %v582_v55  ;;  %v353_v55 = vld [vmem:[%s1275_s24 + $0x6b0] sm:$0xff]  ;;  %v615_v58 = vmul.f32 %v1285_v10, %v352_v53 }
  0xf1   : > { %839 = vst [vmem:[%s1294_s17 + $0x5a8] sm:$0xff] %v583_v57  ;;  %v354_v57 = vld [vmem:[%s1275_s24 + $0x6b8] sm:$0xff]  ;;  %v616_v60 = vmul.f32 %v1285_v10, %v353_v55 }
  0xf2   : > { %840 = vst [vmem:[%s1294_s17 + $0x5b0] sm:$0xff] %v584_v59  ;;  %v355_v59 = vld [vmem:[%s1275_s24 + $0x6c0] sm:$0xff]  ;;  %v617_v62 = vmul.f32 %v1285_v10, %v354_v57 }
  0xf3   : > { %841 = vst [vmem:[%s1294_s17 + $0x5b8] sm:$0xff] %v585_v61  ;;  %v356_v61 = vld [vmem:[%s1275_s24 + $0x6c8] sm:$0xff]  ;;  %v618_v0 = vmul.f32 %v1285_v10, %v355_v59 }
  0xf4   : > { %842 = vst [vmem:[%s1294_s17 + $0x5c0] sm:$0xff] %v586_v63  ;;  %v357_v63 = vld [vmem:[%s1275_s24 + $0x6d0] sm:$0xff]  ;;  %v619_v2 = vmul.f32 %v1285_v10, %v356_v61 }
  0xf5   : > { %843 = vst [vmem:[%s1294_s17 + $0x5c8] sm:$0xff] %v587_v1  ;;  %v358_v1 = vld [vmem:[%s1275_s24 + $0x6d8] sm:$0xff]  ;;  %v620_v4 = vmul.f32 %v1285_v10, %v357_v63 }
  0xf6   : > { %844 = vst [vmem:[%s1294_s17 + $0x5d0] sm:$0xff] %v588_v3  ;;  %v359_v3 = vld [vmem:[%s1275_s24 + $0x6e0] sm:$0xff]  ;;  %v621_v6 = vmul.f32 %v1285_v10, %v358_v1 }
  0xf7   : > { %845 = vst [vmem:[%s1294_s17 + $0x5d8] sm:$0xff] %v589_v5  ;;  %v360_v5 = vld [vmem:[%s1275_s24 + $0x6e8] sm:$0xff]  ;;  %v622_v8 = vmul.f32 %v1285_v10, %v359_v3 }
  0xf8   : > { %846 = vst [vmem:[%s1294_s17 + $0x5e0] sm:$0xff] %v590_v7  ;;  %v361_v7 = vld [vmem:[%s1275_s24 + $0x6f0] sm:$0xff]  ;;  %v623_v11 = vmul.f32 %v1285_v10, %v360_v5 }
  0xf9   : > { %847 = vst [vmem:[%s1294_s17 + $0x5e8] sm:$0xff] %v591_v9  ;;  %v362_v9 = vld [vmem:[%s1275_s24 + $0x6f8] sm:$0xff]  ;;  %v624_v13 = vmul.f32 %v1285_v10, %v361_v7 }
  0xfa   : > { %848 = vst [vmem:[%s1294_s17 + $0x5f0] sm:$0xff] %v592_v12  ;;  %v363_v12 = vld [vmem:[%s1275_s24 + $0x700] sm:$0xff]  ;;  %v625_v15 = vmul.f32 %v1285_v10, %v362_v9 }
  0xfb   : > { %849 = vst [vmem:[%s1294_s17 + $0x5f8] sm:$0xff] %v593_v14  ;;  %v364_v14 = vld [vmem:[%s1275_s24 + $0x708] sm:$0xff]  ;;  %v626_v17 = vmul.f32 %v1285_v10, %v363_v12 }
  0xfc   : > { %850 = vst [vmem:[%s1294_s17 + $0x600] sm:$0xff] %v594_v16  ;;  %v365_v16 = vld [vmem:[%s1275_s24 + $0x710] sm:$0xff]  ;;  %v627_v19 = vmul.f32 %v1285_v10, %v364_v14 }
  0xfd   : > { %851 = vst [vmem:[%s1294_s17 + $0x608] sm:$0xff] %v595_v18  ;;  %v366_v18 = vld [vmem:[%s1275_s24 + $0x718] sm:$0xff]  ;;  %v628_v21 = vmul.f32 %v1285_v10, %v365_v16 }
  0xfe   : > { %852 = vst [vmem:[%s1294_s17 + $0x610] sm:$0xff] %v596_v20  ;;  %v367_v20 = vld [vmem:[%s1275_s24 + $0x720] sm:$0xff]  ;;  %v629_v23 = vmul.f32 %v1285_v10, %v366_v18 }
  0xff   : > { %853 = vst [vmem:[%s1294_s17 + $0x618] sm:$0xff] %v597_v22  ;;  %v368_v22 = vld [vmem:[%s1275_s24 + $0x728] sm:$0xff]  ;;  %v630_v25 = vmul.f32 %v1285_v10, %v367_v20 }
 0x100   : > { %854 = vst [vmem:[%s1294_s17 + $0x620] sm:$0xff] %v598_v24  ;;  %v369_v24 = vld [vmem:[%s1275_s24 + $0x730] sm:$0xff]  ;;  %v631_v27 = vmul.f32 %v1285_v10, %v368_v22 }
 0x101   : > { %855 = vst [vmem:[%s1294_s17 + $0x628] sm:$0xff] %v599_v26  ;;  %v370_v26 = vld [vmem:[%s1275_s24 + $0x738] sm:$0xff]  ;;  %v632_v29 = vmul.f32 %v1285_v10, %v369_v24 }
 0x102   : > { %856 = vst [vmem:[%s1294_s17 + $0x630] sm:$0xff] %v600_v28  ;;  %v371_v28 = vld [vmem:[%s1275_s24 + $0x740] sm:$0xff]  ;;  %v633_v31 = vmul.f32 %v1285_v10, %v370_v26 }
 0x103   : > { %857 = vst [vmem:[%s1294_s17 + $0x638] sm:$0xff] %v601_v30  ;;  %v372_v30 = vld [vmem:[%s1275_s24 + $0x748] sm:$0xff]  ;;  %v634_v33 = vmul.f32 %v1285_v10, %v371_v28 }
 0x104   : > { %858 = vst [vmem:[%s1294_s17 + $0x640] sm:$0xff] %v602_v32  ;;  %v373_v32 = vld [vmem:[%s1275_s24 + $0x750] sm:$0xff]  ;;  %v635_v35 = vmul.f32 %v1285_v10, %v372_v30 }
 0x105   : > { %859 = vst [vmem:[%s1294_s17 + $0x648] sm:$0xff] %v603_v34  ;;  %v374_v34 = vld [vmem:[%s1275_s24 + $0x758] sm:$0xff]  ;;  %v636_v37 = vmul.f32 %v1285_v10, %v373_v32 }
 0x106   : > { %860 = vst [vmem:[%s1294_s17 + $0x650] sm:$0xff] %v604_v36  ;;  %v375_v36 = vld [vmem:[%s1275_s24 + $0x760] sm:$0xff]  ;;  %v637_v39 = vmul.f32 %v1285_v10, %v374_v34 }
 0x107   : > { %861 = vst [vmem:[%s1294_s17 + $0x658] sm:$0xff] %v605_v38  ;;  %v376_v38 = vld [vmem:[%s1275_s24 + $0x768] sm:$0xff]  ;;  %v638_v41 = vmul.f32 %v1285_v10, %v375_v36 }
 0x108   : > { %862 = vst [vmem:[%s1294_s17 + $0x660] sm:$0xff] %v606_v40  ;;  %v377_v40 = vld [vmem:[%s1275_s24 + $0x770] sm:$0xff]  ;;  %v639_v43 = vmul.f32 %v1285_v10, %v376_v38 }
 0x109   : > { %863 = vst [vmem:[%s1294_s17 + $0x668] sm:$0xff] %v607_v42  ;;  %v378_v42 = vld [vmem:[%s1275_s24 + $0x778] sm:$0xff]  ;;  %v640_v45 = vmul.f32 %v1285_v10, %v377_v40 }
 0x10a   : > { %864 = vst [vmem:[%s1294_s17 + $0x670] sm:$0xff] %v608_v44  ;;  %v379_v44 = vld [vmem:[%s1275_s24 + $0x780] sm:$0xff]  ;;  %v641_v47 = vmul.f32 %v1285_v10, %v378_v42 }
 0x10b   : > { %865 = vst [vmem:[%s1294_s17 + $0x678] sm:$0xff] %v609_v46  ;;  %v380_v46 = vld [vmem:[%s1275_s24 + $0x788] sm:$0xff]  ;;  %v642_v49 = vmul.f32 %v1285_v10, %v379_v44 }
 0x10c   : > { %866 = vst [vmem:[%s1294_s17 + $0x680] sm:$0xff] %v610_v48  ;;  %v381_v48 = vld [vmem:[%s1275_s24 + $0x790] sm:$0xff]  ;;  %v643_v51 = vmul.f32 %v1285_v10, %v380_v46 }
 0x10d   : > { %867 = vst [vmem:[%s1294_s17 + $0x688] sm:$0xff] %v611_v50  ;;  %v382_v50 = vld [vmem:[%s1275_s24 + $0x798] sm:$0xff]  ;;  %v644_v53 = vmul.f32 %v1285_v10, %v381_v48 }
 0x10e   : > { %868 = vst [vmem:[%s1294_s17 + $0x690] sm:$0xff] %v612_v52  ;;  %v383_v52 = vld [vmem:[%s1275_s24 + $0x7a0] sm:$0xff]  ;;  %v645_v55 = vmul.f32 %v1285_v10, %v382_v50 }
 0x10f   : > { %869 = vst [vmem:[%s1294_s17 + $0x698] sm:$0xff] %v613_v54  ;;  %v384_v54 = vld [vmem:[%s1275_s24 + $0x7a8] sm:$0xff]  ;;  %v646_v57 = vmul.f32 %v1285_v10, %v383_v52 }
 0x110   : > { %870 = vst [vmem:[%s1294_s17 + $0x6a0] sm:$0xff] %v614_v56  ;;  %v385_v56 = vld [vmem:[%s1275_s24 + $0x7b0] sm:$0xff]  ;;  %v647_v59 = vmul.f32 %v1285_v10, %v384_v54 }
 0x111   : > { %871 = vst [vmem:[%s1294_s17 + $0x6a8] sm:$0xff] %v615_v58  ;;  %v386_v58 = vld [vmem:[%s1275_s24 + $0x7b8] sm:$0xff]  ;;  %v648_v61 = vmul.f32 %v1285_v10, %v385_v56 }
 0x112   : > { %872 = vst [vmem:[%s1294_s17 + $0x6b0] sm:$0xff] %v616_v60  ;;  %v387_v60 = vld [vmem:[%s1275_s24 + $0x7c0] sm:$0xff]  ;;  %v649_v63 = vmul.f32 %v1285_v10, %v386_v58 }
 0x113   : > { %873 = vst [vmem:[%s1294_s17 + $0x6b8] sm:$0xff] %v617_v62  ;;  %v388_v62 = vld [vmem:[%s1275_s24 + $0x7c8] sm:$0xff]  ;;  %v650_v1 = vmul.f32 %v1285_v10, %v387_v60 }
 0x114   : > { %874 = vst [vmem:[%s1294_s17 + $0x6c0] sm:$0xff] %v618_v0  ;;  %v389_v0 = vld [vmem:[%s1275_s24 + $0x7d0] sm:$0xff]  ;;  %v651_v3 = vmul.f32 %v1285_v10, %v388_v62 }
 0x115   : > { %875 = vst [vmem:[%s1294_s17 + $0x6c8] sm:$0xff] %v619_v2  ;;  %v390_v2 = vld [vmem:[%s1275_s24 + $0x7d8] sm:$0xff]  ;;  %v652_v5 = vmul.f32 %v1285_v10, %v389_v0 }
 0x116   : > { %876 = vst [vmem:[%s1294_s17 + $0x6d0] sm:$0xff] %v620_v4  ;;  %v391_v4 = vld [vmem:[%s1275_s24 + $0x7e0] sm:$0xff]  ;;  %v653_v7 = vmul.f32 %v1285_v10, %v390_v2 }
 0x117   : > { %877 = vst [vmem:[%s1294_s17 + $0x6d8] sm:$0xff] %v621_v6  ;;  %v392_v6 = vld [vmem:[%s1275_s24 + $0x7e8] sm:$0xff]  ;;  %v654_v9 = vmul.f32 %v1285_v10, %v391_v4 }
 0x118   : > { %878 = vst [vmem:[%s1294_s17 + $0x6e0] sm:$0xff] %v622_v8  ;;  %v393_v8 = vld [vmem:[%s1275_s24 + $0x7f0] sm:$0xff]  ;;  %v655_v12 = vmul.f32 %v1285_v10, %v392_v6 }
 0x119   : > { %879 = vst [vmem:[%s1294_s17 + $0x6e8] sm:$0xff] %v623_v11  ;;  %v394_v11 = vld [vmem:[%s1275_s24 + $0x7f8] sm:$0xff] }
 0x11a   : > { %880 = vst [vmem:[%s1294_s17 + $0x6f0] sm:$0xff] %v624_v13  ;;  %v656_v13 = vmul.f32 %v1285_v10, %v393_v8  ;;  %v657_v14 = vmul.f32 %v1285_v10, %v394_v11 }
 0x11b   : > { %881 = vst [vmem:[%s1294_s17 + $0x6f8] sm:$0xff] %v625_v15 }
 0x11c   : > { %882 = vst [vmem:[%s1294_s17 + $0x700] sm:$0xff] %v626_v17 }
 0x11d   : > { %883 = vst [vmem:[%s1294_s17 + $0x708] sm:$0xff] %v627_v19 }
 0x11e   : > { %884 = vst [vmem:[%s1294_s17 + $0x710] sm:$0xff] %v628_v21 }
 0x11f   : > { %885 = vst [vmem:[%s1294_s17 + $0x718] sm:$0xff] %v629_v23 }
 0x120   : > { %886 = vst [vmem:[%s1294_s17 + $0x720] sm:$0xff] %v630_v25 }
 0x121   : > { %887 = vst [vmem:[%s1294_s17 + $0x728] sm:$0xff] %v631_v27 }
 0x122   : > { %888 = vst [vmem:[%s1294_s17 + $0x730] sm:$0xff] %v632_v29 }
 0x123   : > { %889 = vst [vmem:[%s1294_s17 + $0x738] sm:$0xff] %v633_v31 }
 0x124   : > { %890 = vst [vmem:[%s1294_s17 + $0x740] sm:$0xff] %v634_v33 }
 0x125   : > { %891 = vst [vmem:[%s1294_s17 + $0x748] sm:$0xff] %v635_v35 }
 0x126   : > { %892 = vst [vmem:[%s1294_s17 + $0x750] sm:$0xff] %v636_v37 }
 0x127   : > { %893 = vst [vmem:[%s1294_s17 + $0x758] sm:$0xff] %v637_v39 }
 0x128   : > { %894 = vst [vmem:[%s1294_s17 + $0x760] sm:$0xff] %v638_v41 }
 0x129   : > { %895 = vst [vmem:[%s1294_s17 + $0x768] sm:$0xff] %v639_v43 }
 0x12a   : > { %896 = vst [vmem:[%s1294_s17 + $0x770] sm:$0xff] %v640_v45 }
 0x12b   : > { %897 = vst [vmem:[%s1294_s17 + $0x778] sm:$0xff] %v641_v47 }
 0x12c   : > { %898 = vst [vmem:[%s1294_s17 + $0x780] sm:$0xff] %v642_v49 }
 0x12d   : > { %899 = vst [vmem:[%s1294_s17 + $0x788] sm:$0xff] %v643_v51 }
 0x12e   : > { %900 = vst [vmem:[%s1294_s17 + $0x790] sm:$0xff] %v644_v53 }
 0x12f   : > { %901 = vst [vmem:[%s1294_s17 + $0x798] sm:$0xff] %v645_v55 }
 0x130   : > { %902 = vst [vmem:[%s1294_s17 + $0x7a0] sm:$0xff] %v646_v57 }
 0x131   : > { %903 = vst [vmem:[%s1294_s17 + $0x7a8] sm:$0xff] %v647_v59 }
 0x132   : > { %904 = vst [vmem:[%s1294_s17 + $0x7b0] sm:$0xff] %v648_v61 }
 0x133   : > { %905 = vst [vmem:[%s1294_s17 + $0x7b8] sm:$0xff] %v649_v63 }
 0x134   : > { %906 = vst [vmem:[%s1294_s17 + $0x7c0] sm:$0xff] %v650_v1 }
 0x135   : > { %907 = vst [vmem:[%s1294_s17 + $0x7c8] sm:$0xff] %v651_v3 }
 0x136   : > { %908 = vst [vmem:[%s1294_s17 + $0x7d0] sm:$0xff] %v652_v5 }
 0x137   : > { %909 = vst [vmem:[%s1294_s17 + $0x7d8] sm:$0xff] %v653_v7 }
 0x138   : > { %910 = vst [vmem:[%s1294_s17 + $0x7e0] sm:$0xff] %v654_v9 }
 0x139   : > { %911 = vst [vmem:[%s1294_s17 + $0x7e8] sm:$0xff] %v655_v12 }
 0x13a   : > { %912 = vst [vmem:[%s1294_s17 + $0x7f0] sm:$0xff] %v656_v13 }
 0x13b   : > { %913 = vst [vmem:[%s1294_s17 + $0x7f8] sm:$0xff] %v657_v14 }
 0x13c   : > { %1129 = shalt.err (!%p1126_p4)
}
 0x13d   : > { %s1173_s16 = smov 128   ;;  %s1174_s20 = smov 8  }
 0x13e   : > { %1021 = dma.vmem_to_hbm [thread:$0]  (%p1235_p11), %s928_s28, 32768, %s930_s29, %s915_s30, %s1173_s16, %s1173_s16, %s1174_s20  }
 0x13f PF: > { %s944_s21 = sand.u32 1, %s1156_s6   ;;  %p2094_p7 = scmp.ge.s32.totalorder %s1168_s9, 2 }
 0x140   : > { %s945_s22 = scalar_lea.sflag [#allocation4], %s944_s21 }
 0x141   : > { %p1028_p5 = pnand %p2094_p7, %p1239_p12 }
 0x143   : > { %p1029_p8 = pneg %p1028_p5 }
 0x145   : > { %1151 = dma.done.wait (%p1029_p8), %s945_s22, 32768  }
 0x146   : > { %1153 = vsyncadd (%p1029_p8), %s945_s22, 4294934528  ;;  %p14_p10 = scmp.ge.s32.totalorder %s1210_s12, 4   ;;  %s2095_s6 = smov %s1160_s7 }
 0x147   : > { %s2096_s7 = smov %s1164_s8  ;;  %s2097_s8 = smov %s1222_s15 }
 0x148   : > { %s2098_s9 = smov %s1210_s12  ;;  %16 = sbr.rel (!%p14_p10) target bundleno = 5 (0x5), region = 69 }
 0x14d   :  { %951 = vsyncpa [#allocation3], 1 }
 0x14e   :  { %953 = vsyncpa [#allocation3 + $0x1], 1 }
 0x14f   :  { %954 = vsyncpa [#allocation4], 1 }
 0x150   :  { %956 = vsyncpa [#allocation4 + $0x1], 1 }

</bundles_post_ra>
